<compile_context>
chip_gen: v7x
topology: tpu7x:2x2x1
jax: 0.10.0
libtpu: 0.0.40
codegen_flags: <defaults>
</compile_context>

<pallas_src>
import functools

import jax
import jax.numpy as jnp
from jax.experimental import pallas as pl
from jax.experimental.pallas import tpu as pltpu

# ----------------------------- configuration --------------------------------
B = 2              # batch
T = 3              # number of frames (list length in the PyTorch forward)
C_IN = 4           # image channels
SP = 16            # spatial H = W
FEAT = 768         # backbone output / LSTM input size (fixed by the module)
HID = 32           # feature_size (LSTM hidden)
HID2 = HID // 2    # classifier hidden width
CLS = 4            # classes_num
G = 4 * HID        # LSTM gate width = 128 = exactly one vreg lane width
LANES = 128        # lane padding used for the classifier / output path
EPS = 1e-5         # BatchNorm eps

assert G == LANES, "gate width must equal the 128-lane padding used below"


# --------------------------- fused forward kernel ----------------------------
def _make_kernel(t, b, with_attention):
    """Backbone + LSTM + classifier + time-sum in one invocation (no grid)."""

    def kernel(img_ref, wcomb_ref, rows_ref, wpack_ref, out_ref, *attn_refs):
        f32 = jnp.float32
        bf16 = jnp.bfloat16

        # ---------------- backbone: all T frames at once ---------------------
        img = img_ref[...]                                  # (T*B, C, HW) f32
        if with_attention:                                  # dead work skipped in train
            attn_refs[0][...] = jnp.mean(img, axis=1)       # channel-mean map (T*B, HW)

        pooled = jnp.mean(img, axis=-1)                     # global avg pool -> (T*B, C)

        # ---------------- unpack the packed parameter blocks -----------------
        rows = rows_ref[...]                                # (8, 128) f32
        b_comb = rows[0:1]                                  # folded bias (g-gate x2)
        bn1_g, bn1_b = rows[1:2], rows[2:3]
        b1 = rows[3:4]
        bn2_g, bn2_b = rows[4:5], rows[5:6]
        b2 = rows[6:7]

        whh = wpack_ref[0]                                  # (128,128) bf16, rows[HID:)=0
        w1 = wpack_ref[1]                                   # (128,128) bf16, rows[HID:)=0
        w2 = wpack_ref[2]                                   # (128,128) bf16, rows[HID2:)=0

        # --- LSTM input projection for every step at once (backbone folded in,
        # --- so the contraction depth is only C=4 instead of 768) -------------
        gx = jnp.dot(pooled, wcomb_ref[...],
                     preferred_element_type=f32) + b_comb   # (T*B, G)

        h = jnp.zeros((b, G), f32)        # hidden state (pad lanes stay bounded)
        c = jnp.zeros((b, G), f32)        # cell state
        hs = []

        # T is tiny & static -> fully unrolled recurrence; only the cell update
        # stays in the serial chain, the classifier is batched over T below.
        for step in range(t):
            gates = gx[step * b:(step + 1) * b, :] + jnp.dot(
                h.astype(bf16), whh, preferred_element_type=f32)          # (B, G)

            # One full-lane sigmoid per step (EUP); PyTorch gate order along the
            # lanes is [i | f | g | o]. pltpu.roll == jnp.roll semantics
            # (out[l] = in[(l - shift) mod G]), so shift G - k*HID brings gate
            # block k down to lanes [0, HID). The cell-gate pre-activations were
            # pre-scaled by 2 in the wrapper, so tanh(x) = 2*sigmoid(2x) - 1.
            sig = jax.nn.sigmoid(gates)
            i_g = sig                                       # lanes [0,HID): input gate
            f_g = pltpu.roll(sig, G - 1 * HID, axis=1)      # forget gate
            g_g = 2.0 * pltpu.roll(sig, G - 2 * HID, axis=1) - 1.0   # cell gate (tanh)
            o_g = pltpu.roll(sig, G - 3 * HID, axis=1)      # output gate

            # No pad-lane mask needed: pad lanes stay bounded (|c_pad| <= T) and
            # the zero-padded rows of whh / w1 keep them out of every real lane.
            c = f_g * c + i_g * g_g
            h = o_g * jnp.tanh(c)
            hs.append(h)

        # -------- classifier, batched over all T steps ------------------------
        # BN1d(train batch stats) -> Linear -> BN1d -> ELU -> Linear, padded to
        # 128 lanes; per-frame BN statistics are preserved exactly.
        ys = []
        for h_s in hs:                                       # per-frame BN1 stats
            mu1 = jnp.mean(h_s, axis=0, keepdims=True)
            var1 = jnp.mean((h_s - mu1) ** 2, axis=0, keepdims=True)   # biased var
            ys.append((h_s - mu1) * jax.lax.rsqrt(var1 + EPS) * bn1_g + bn1_b)
        y = jnp.concatenate(ys, axis=0)                      # (T*B, G)

        z = jnp.dot(y.astype(bf16), w1, preferred_element_type=f32) + b1   # (T*B, 128)

        zs = []
        for step in range(t):                                # per-frame BN2 + ELU
            z_s = z[step * b:(step + 1) * b, :]
            mu2 = jnp.mean(z_s, axis=0, keepdims=True)
            var2 = jnp.mean((z_s - mu2) ** 2, axis=0, keepdims=True)
            z_s = (z_s - mu2) * jax.lax.rsqrt(var2 + EPS) * bn2_g + bn2_b
            # ELU(alpha=1); exp only ever sees the clamped non-positive branch
            zs.append(jnp.where(z_s > 0, z_s, jnp.exp(jnp.minimum(z_s, 0.0)) - 1.0))
        z2 = jnp.concatenate(zs, axis=0)                     # (T*B, 128)

        logits = jnp.dot(z2.astype(bf16), w2,
                         preferred_element_type=f32) + b2    # (T*B, 128)

        acc = jnp.zeros((b, LANES), f32)                     # time-summed logits
        for step in range(t):
            acc = acc + logits[step * b:(step + 1) * b, :]
        out_ref[...] = acc                                   # single lane-dense store

    return kernel


# ------------------------- parameter preparation ------------------------------
def _prepare_params(p):
    """Fold the backbone projection into the LSTM input projection, pre-scale the
    cell-gate columns by 2 (tanh-via-sigmoid trick), zero-pad the tiny classifier
    / recurrent weights to full 128x128 tiles (exact math), and pack everything
    into three tensors so the kernel issues ~4 input DMAs instead of ~14."""
    f32 = jnp.float32
    bf16 = jnp.bfloat16

    # Exact algebraic fold of two back-to-back linear maps (no nonlinearity
    # between the synthetic backbone projection and the LSTM input projection).
    w_ih = p["w_ih"].astype(f32)                                   # (FEAT, G)
    w_comb = p["w_bb"].astype(f32) @ w_ih                          # (C, G)
    b_comb = p["b_bb"].astype(f32) @ w_ih + p["b_gates"].astype(f32)  # (1, G)

    # tanh(x) = 2*sigmoid(2x) - 1: pre-scale the cell-gate (g) pre-activation
    # columns by 2 so the kernel needs only one sigmoid per step.
    lane = jnp.arange(G)
    g_scale = jnp.where((lane >= 2 * HID) & (lane < 3 * HID), 2.0, 1.0).astype(f32)
    w_comb = w_comb * g_scale[None, :]
    b_comb = b_comb * g_scale[None, :]
    w_hh = p["w_hh"].astype(f32) * g_scale[None, :]                # (HID, G)

    def pad_mat(w, rows_, cols):
        return jnp.zeros((rows_, cols), f32).at[:w.shape[0], :w.shape[1]].set(
            w.astype(f32))

    def pad_row(v, cols, fill=0.0):
        return jnp.full((1, cols), fill, f32).at[:, :v.shape[-1]].set(
            v.reshape(1, -1).astype(f32))

    # Packed bf16 matmul weights: [w_hh | w1 | w2], each zero-padded to 128x128.
    wpack = jnp.stack([pad_mat(w_hh, LANES, LANES),
                       pad_mat(p["w1"], LANES, LANES),
                       pad_mat(p["w2"], LANES, LANES)], axis=0).astype(bf16)

    # Packed per-lane row vectors (f32), one (8, 128) block.
    rows = jnp.concatenate([
        b_comb,                                   # row 0: folded LSTM bias
        pad_row(p["bn1_g"], LANES, fill=1.0),     # row 1
        pad_row(p["bn1_b"], LANES),               # row 2
        pad_row(p["b1"], LANES),                  # row 3
        pad_row(p["bn2_g"], LANES, fill=1.0),     # row 4
        pad_row(p["bn2_b"], LANES),               # row 5
        pad_row(p["b2"], LANES),                  # row 6
        jnp.zeros((1, LANES), f32),               # row 7: sublane pad
    ], axis=0)

    return w_comb, rows, wpack


# ------------------------------- full forward --------------------------------
@functools.partial(jax.jit, static_argnames="phase")
def pca_model_forward(images, params, phase="train"):
    # images: (T, B, C, H, W) float32 -- stacked version of the frame list that
    # the PyTorch forward iterates over.
    t, b, ch, h, w = images.shape
    hw = h * w
    imgs = images.reshape(t * b, ch, hw).astype(jnp.float32)
    with_attention = phase == "test"

    w_comb, rows, wpack = _prepare_params(params)
    kernel = _make_kernel(t, b, with_attention)

    out_shape = [jax.ShapeDtypeStruct((b, LANES), jnp.float32)]
    if with_attention:
        out_shape.append(jax.ShapeDtypeStruct((t * b, hw), jnp.float32))

    vmem = pl.BlockSpec(memory_space=pltpu.MemorySpace.VMEM)
    results = pl.pallas_call(
        kernel,
        out_shape=tuple(out_shape),
        in_specs=[vmem, vmem, vmem, vmem],         # whole arrays resident in VMEM
        out_specs=tuple([vmem] * len(out_shape)),  # no grid: single invocation
        # TODO(synk): for realistic batch sizes, add a leading batch-tile grid
        # axis marked "parallel" so v7x's second TensorCore shares the
        # per-row-independent recurrence; at B=2 it would only add overhead.
    )(imgs, w_comb, rows, wpack)

    outputs = results[0][:, :CLS]                  # un-pad the lane-dense output
    if with_attention:
        attns = results[1].reshape(t, b, h, w)     # per-frame attention maps
        return outputs, attns
    return outputs, 0, 0, 0
    # TODO(synk): the code after `return` in the PyTorch forward (randperm
    # augmentation branch) is unreachable and is not implemented.
    # TODO(synk): BatchNorm uses per-batch statistics in BOTH phases (matches
    # PyTorch only if the module stays in train() mode for phase == 'test').


# ------------------------------- parameters ----------------------------------
def init_params(key):
    ks = jax.random.split(key, 10)
    s = 0.02
    return {
        # synthetic backbone: 1x1-projection after global avg pool
        "w_bb": jax.random.normal(ks[0], (C_IN, FEAT), jnp.float32) * s,
        "b_bb": jax.random.normal(ks[1], (1, FEAT), jnp.float32) * s,
        # LSTM (input 768 -> hidden HID), PyTorch gate order i,f,g,o
        "w_ih": jax.random.normal(ks[2], (FEAT, 4 * HID), jnp.float32) * s,
        "w_hh": jax.random.normal(ks[3], (HID, 4 * HID), jnp.float32) * s,
        "b_gates": jax.random.normal(ks[4], (1, 4 * HID), jnp.float32) * s,
        # classifier
        "bn1_g": jnp.ones((1, HID), jnp.float32),
        "bn1_b": jnp.zeros((1, HID), jnp.float32),
        "w1": jax.random.normal(ks[5], (HID, HID2), jnp.float32) * s,
        "b1": jax.random.normal(ks[6], (1, HID2), jnp.float32) * s,
        "bn2_g": jnp.ones((1, HID2), jnp.float32),
        "bn2_b": jnp.zeros((1, HID2), jnp.float32),
        "w2": jax.random.normal(ks[7], (HID2, CLS), jnp.float32) * s,
        "b2": jax.random.normal(ks[8], (1, CLS), jnp.float32) * s,
    }


if __name__ == "__main__":
    key = jax.random.PRNGKey(0)
    pkey, xkey = jax.random.split(key)
    params = init_params(pkey)
    images = jax.random.normal(xkey, (T, B, C_IN, SP, SP), jnp.float32)

    # train phase: logits only (no attention compute / output is compiled)
    outputs, _, _, _ = pca_model_forward(images, params, phase="train")
    outputs = jax.block_until_ready(outputs)
    assert outputs.shape == (B, CLS)
    assert bool(jnp.all(jnp.isfinite(outputs)))

    # test phase: logits + per-frame channel-mean attention maps
    outputs_t, attns = pca_model_forward(images, params, phase="test")
    outputs_t = jax.block_until_ready(outputs_t)
    attns = jax.block_until_ready(attns)
    assert attns.shape == (T, B, SP, SP)
    assert bool(jnp.all(jnp.isfinite(attns)))
    assert jnp.allclose(outputs, outputs_t, atol=1e-4, rtol=1e-4)

    print("KERNEL_OK")
</pallas_src>

<mosaic_0001>
module attributes {stable_mosaic.version = 11 : i64} {
  func.func @kernel(%arg0: memref<6x4x256xf32, #tpu.memory_space<vmem>>, %arg1: memref<4x128xf32, #tpu.memory_space<vmem>>, %arg2: memref<8x128xf32, #tpu.memory_space<vmem>>, %arg3: memref<3x128x128xbf16, #tpu.memory_space<vmem>>, %arg4: memref<2x128xf32, #tpu.memory_space<vmem>>) attributes {dimension_semantics = [], scalar_prefetch = 0 : i64, scratch_operands = 0 : i64, tpu.core_type = #tpu.core_type<tc>} {
    %c0 = arith.constant 0 : index
    %c0_0 = arith.constant 0 : index
    %c0_1 = arith.constant 0 : index
    %0 = vector.load %arg0[%c0, %c0_0, %c0_1] : memref<6x4x256xf32, #tpu.memory_space<vmem>>, vector<6x4x256xf32>
    %cst = arith.constant dense<0.000000e+00> : vector<6x4xf32>
    %1 = vector.multi_reduction <add>, %0, %cst [2] : vector<6x4x256xf32> to vector<6x4xf32>
    %cst_2 = arith.constant 2.560000e+02 : f32
    %2 = vector.broadcast %cst_2 : f32 to vector<6x4xf32>
    %3 = arith.divf %1, %2 : vector<6x4xf32>
    %c0_3 = arith.constant 0 : index
    %c0_4 = arith.constant 0 : index
    %4 = vector.load %arg2[%c0_3, %c0_4] : memref<8x128xf32, #tpu.memory_space<vmem>>, vector<8x128xf32>
    %5 = vector.extract_strided_slice %4 {offsets = [0, 0], sizes = [1, 128], strides = [1, 1]} : vector<8x128xf32> to vector<1x128xf32>
    %6 = vector.extract_strided_slice %4 {offsets = [1, 0], sizes = [1, 128], strides = [1, 1]} : vector<8x128xf32> to vector<1x128xf32>
    %7 = vector.extract_strided_slice %4 {offsets = [2, 0], sizes = [1, 128], strides = [1, 1]} : vector<8x128xf32> to vector<1x128xf32>
    %8 = vector.extract_strided_slice %4 {offsets = [3, 0], sizes = [1, 128], strides = [1, 1]} : vector<8x128xf32> to vector<1x128xf32>
    %9 = vector.extract_strided_slice %4 {offsets = [4, 0], sizes = [1, 128], strides = [1, 1]} : vector<8x128xf32> to vector<1x128xf32>
    %10 = vector.extract_strided_slice %4 {offsets = [5, 0], sizes = [1, 128], strides = [1, 1]} : vector<8x128xf32> to vector<1x128xf32>
    %11 = vector.extract_strided_slice %4 {offsets = [6, 0], sizes = [1, 128], strides = [1, 1]} : vector<8x128xf32> to vector<1x128xf32>
    %c0_5 = arith.constant 0 : index
    %c0_6 = arith.constant 0 : index
    %c0_7 = arith.constant 0 : index
    %12 = vector.load %arg3[%c0_5, %c0_6, %c0_7] : memref<3x128x128xbf16, #tpu.memory_space<vmem>>, vector<1x128x128xbf16>
    %13 = vector.shape_cast %12 : vector<1x128x128xbf16> to vector<128x128xbf16>
    %c1 = arith.constant 1 : index
    %c0_8 = arith.constant 0 : index
    %c0_9 = arith.constant 0 : index
    %14 = vector.load %arg3[%c1, %c0_8, %c0_9] : memref<3x128x128xbf16, #tpu.memory_space<vmem>>, vector<1x128x128xbf16>
    %15 = vector.shape_cast %14 : vector<1x128x128xbf16> to vector<128x128xbf16>
    %c2 = arith.constant 2 : index
    %c0_10 = arith.constant 0 : index
    %c0_11 = arith.constant 0 : index
    %16 = vector.load %arg3[%c2, %c0_10, %c0_11] : memref<3x128x128xbf16, #tpu.memory_space<vmem>>, vector<1x128x128xbf16>
    %17 = vector.shape_cast %16 : vector<1x128x128xbf16> to vector<128x128xbf16>
    %c0_12 = arith.constant 0 : index
    %c0_13 = arith.constant 0 : index
    %18 = vector.load %arg1[%c0_12, %c0_13] : memref<4x128xf32, #tpu.memory_space<vmem>>, vector<4x128xf32>
    %cst_14 = arith.constant dense<0.000000e+00> : vector<6x128xf32>
    %19 = tpu.matmul %3, %18, %cst_14 {dimension_numbers = #tpu.dot_dimension_numbers<[1], [0], [0], [1], [0, 0, 1, 1], [], []>} : vector<6x4xf32>, vector<4x128xf32>, vector<6x128xf32> -> vector<6x128xf32>
    %20 = vector.broadcast %5 : vector<1x128xf32> to vector<6x128xf32>
    %21 = arith.addf %19, %20 : vector<6x128xf32>
    %cst_15 = arith.constant 0.000000e+00 : f32
    %22 = vector.broadcast %cst_15 : f32 to vector<2x128xf32>
    %cst_16 = arith.constant 0.000000e+00 : f32
    %23 = vector.broadcast %cst_16 : f32 to vector<2x128xf32>
    %24 = vector.extract_strided_slice %21 {offsets = [0, 0], sizes = [2, 128], strides = [1, 1]} : vector<6x128xf32> to vector<2x128xf32>
    %25 = arith.truncf %22 : vector<2x128xf32> to vector<2x128xbf16>
    %cst_17 = arith.constant dense<0.000000e+00> : vector<2x128xf32>
    %26 = tpu.matmul %25, %13, %cst_17 {dimension_numbers = #tpu.dot_dimension_numbers<[1], [0], [0], [1], [0, 0, 1, 1], [], []>} : vector<2x128xbf16>, vector<128x128xbf16>, vector<2x128xf32> -> vector<2x128xf32>
    %27 = arith.addf %24, %26 : vector<2x128xf32>
    %28 = arith.negf %27 : vector<2x128xf32>
    %29 = math.exp %28 : vector<2x128xf32>
    %cst_18 = arith.constant 1.000000e+00 : f32
    %30 = vector.broadcast %cst_18 : f32 to vector<2x128xf32>
    %31 = arith.addf %30, %29 : vector<2x128xf32>
    %32 = arith.divf %30, %31 : vector<2x128xf32>
    %c96_i32 = arith.constant 96 : i32
    %33 = tpu.dynamic_rotate %32 by %c96_i32 dim 1 : vector<2x128xf32>, i32 -> vector<2x128xf32>
    %c64_i32 = arith.constant 64 : i32
    %34 = tpu.dynamic_rotate %32 by %c64_i32 dim 1 : vector<2x128xf32>, i32 -> vector<2x128xf32>
    %cst_19 = arith.constant 2.000000e+00 : f32
    %35 = vector.broadcast %cst_19 : f32 to vector<2x128xf32>
    %36 = arith.mulf %35, %34 : vector<2x128xf32>
    %cst_20 = arith.constant 1.000000e+00 : f32
    %37 = vector.broadcast %cst_20 : f32 to vector<2x128xf32>
    %38 = arith.subf %36, %37 : vector<2x128xf32>
    %c32_i32 = arith.constant 32 : i32
    %39 = tpu.dynamic_rotate %32 by %c32_i32 dim 1 : vector<2x128xf32>, i32 -> vector<2x128xf32>
    %40 = arith.mulf %33, %23 : vector<2x128xf32>
    %41 = arith.mulf %32, %38 : vector<2x128xf32>
    %42 = arith.addf %40, %41 : vector<2x128xf32>
    %43 = math.tanh %42 : vector<2x128xf32>
    %44 = arith.mulf %39, %43 : vector<2x128xf32>
    %45 = vector.extract_strided_slice %21 {offsets = [2, 0], sizes = [2, 128], strides = [1, 1]} : vector<6x128xf32> to vector<2x128xf32>
    %46 = arith.truncf %44 : vector<2x128xf32> to vector<2x128xbf16>
    %cst_21 = arith.constant dense<0.000000e+00> : vector<2x128xf32>
    %47 = tpu.matmul %46, %13, %cst_21 {dimension_numbers = #tpu.dot_dimension_numbers<[1], [0], [0], [1], [0, 0, 1, 1], [], []>} : vector<2x128xbf16>, vector<128x128xbf16>, vector<2x128xf32> -> vector<2x128xf32>
    %48 = arith.addf %45, %47 : vector<2x128xf32>
    %49 = arith.negf %48 : vector<2x128xf32>
    %50 = math.exp %49 : vector<2x128xf32>
    %cst_22 = arith.constant 1.000000e+00 : f32
    %51 = vector.broadcast %cst_22 : f32 to vector<2x128xf32>
    %52 = arith.addf %51, %50 : vector<2x128xf32>
    %53 = arith.divf %51, %52 : vector<2x128xf32>
    %c96_i32_23 = arith.constant 96 : i32
    %54 = tpu.dynamic_rotate %53 by %c96_i32_23 dim 1 : vector<2x128xf32>, i32 -> vector<2x128xf32>
    %c64_i32_24 = arith.constant 64 : i32
    %55 = tpu.dynamic_rotate %53 by %c64_i32_24 dim 1 : vector<2x128xf32>, i32 -> vector<2x128xf32>
    %cst_25 = arith.constant 2.000000e+00 : f32
    %56 = vector.broadcast %cst_25 : f32 to vector<2x128xf32>
    %57 = arith.mulf %56, %55 : vector<2x128xf32>
    %cst_26 = arith.constant 1.000000e+00 : f32
    %58 = vector.broadcast %cst_26 : f32 to vector<2x128xf32>
    %59 = arith.subf %57, %58 : vector<2x128xf32>
    %c32_i32_27 = arith.constant 32 : i32
    %60 = tpu.dynamic_rotate %53 by %c32_i32_27 dim 1 : vector<2x128xf32>, i32 -> vector<2x128xf32>
    %61 = arith.mulf %54, %42 : vector<2x128xf32>
    %62 = arith.mulf %53, %59 : vector<2x128xf32>
    %63 = arith.addf %61, %62 : vector<2x128xf32>
    %64 = math.tanh %63 : vector<2x128xf32>
    %65 = arith.mulf %60, %64 : vector<2x128xf32>
    %66 = vector.extract_strided_slice %21 {offsets = [4, 0], sizes = [2, 128], strides = [1, 1]} : vector<6x128xf32> to vector<2x128xf32>
    %67 = arith.truncf %65 : vector<2x128xf32> to vector<2x128xbf16>
    %cst_28 = arith.constant dense<0.000000e+00> : vector<2x128xf32>
    %68 = tpu.matmul %67, %13, %cst_28 {dimension_numbers = #tpu.dot_dimension_numbers<[1], [0], [0], [1], [0, 0, 1, 1], [], []>} : vector<2x128xbf16>, vector<128x128xbf16>, vector<2x128xf32> -> vector<2x128xf32>
    %69 = arith.addf %66, %68 : vector<2x128xf32>
    %70 = arith.negf %69 : vector<2x128xf32>
    %71 = math.exp %70 : vector<2x128xf32>
    %cst_29 = arith.constant 1.000000e+00 : f32
    %72 = vector.broadcast %cst_29 : f32 to vector<2x128xf32>
    %73 = arith.addf %72, %71 : vector<2x128xf32>
    %74 = arith.divf %72, %73 : vector<2x128xf32>
    %c96_i32_30 = arith.constant 96 : i32
    %75 = tpu.dynamic_rotate %74 by %c96_i32_30 dim 1 : vector<2x128xf32>, i32 -> vector<2x128xf32>
    %c64_i32_31 = arith.constant 64 : i32
    %76 = tpu.dynamic_rotate %74 by %c64_i32_31 dim 1 : vector<2x128xf32>, i32 -> vector<2x128xf32>
    %cst_32 = arith.constant 2.000000e+00 : f32
    %77 = vector.broadcast %cst_32 : f32 to vector<2x128xf32>
    %78 = arith.mulf %77, %76 : vector<2x128xf32>
    %cst_33 = arith.constant 1.000000e+00 : f32
    %79 = vector.broadcast %cst_33 : f32 to vector<2x128xf32>
    %80 = arith.subf %78, %79 : vector<2x128xf32>
    %c32_i32_34 = arith.constant 32 : i32
    %81 = tpu.dynamic_rotate %74 by %c32_i32_34 dim 1 : vector<2x128xf32>, i32 -> vector<2x128xf32>
    %82 = arith.mulf %75, %63 : vector<2x128xf32>
    %83 = arith.mulf %74, %80 : vector<2x128xf32>
    %84 = arith.addf %82, %83 : vector<2x128xf32>
    %85 = math.tanh %84 : vector<2x128xf32>
    %86 = arith.mulf %81, %85 : vector<2x128xf32>
    %cst_35 = arith.constant dense<0.000000e+00> : vector<128xf32>
    %87 = vector.multi_reduction <add>, %44, %cst_35 [0] : vector<2x128xf32> to vector<128xf32>
    %88 = vector.shape_cast %87 : vector<128xf32> to vector<1x128xf32>
    %cst_36 = arith.constant 2.000000e+00 : f32
    %89 = vector.broadcast %cst_36 : f32 to vector<1x128xf32>
    %90 = arith.divf %88, %89 : vector<1x128xf32>
    %91 = vector.broadcast %90 : vector<1x128xf32> to vector<2x128xf32>
    %92 = arith.subf %44, %91 : vector<2x128xf32>
    %93 = arith.mulf %92, %92 : vector<2x128xf32>
    %cst_37 = arith.constant dense<0.000000e+00> : vector<128xf32>
    %94 = vector.multi_reduction <add>, %93, %cst_37 [0] : vector<2x128xf32> to vector<128xf32>
    %95 = vector.shape_cast %94 : vector<128xf32> to vector<1x128xf32>
    %cst_38 = arith.constant 2.000000e+00 : f32
    %96 = vector.broadcast %cst_38 : f32 to vector<1x128xf32>
    %97 = arith.divf %95, %96 : vector<1x128xf32>
    %98 = vector.broadcast %90 : vector<1x128xf32> to vector<2x128xf32>
    %99 = arith.subf %44, %98 : vector<2x128xf32>
    %cst_39 = arith.constant 9.99999974E-6 : f32
    %100 = vector.broadcast %cst_39 : f32 to vector<1x128xf32>
    %101 = arith.addf %97, %100 : vector<1x128xf32>
    %102 = math.rsqrt %101 : vector<1x128xf32>
    %103 = vector.broadcast %102 : vector<1x128xf32> to vector<2x128xf32>
    %104 = arith.mulf %99, %103 : vector<2x128xf32>
    %105 = vector.broadcast %6 : vector<1x128xf32> to vector<2x128xf32>
    %106 = arith.mulf %104, %105 : vector<2x128xf32>
    %107 = vector.broadcast %7 : vector<1x128xf32> to vector<2x128xf32>
    %108 = arith.addf %106, %107 : vector<2x128xf32>
    %cst_40 = arith.constant dense<0.000000e+00> : vector<128xf32>
    %109 = vector.multi_reduction <add>, %65, %cst_40 [0] : vector<2x128xf32> to vector<128xf32>
    %110 = vector.shape_cast %109 : vector<128xf32> to vector<1x128xf32>
    %cst_41 = arith.constant 2.000000e+00 : f32
    %111 = vector.broadcast %cst_41 : f32 to vector<1x128xf32>
    %112 = arith.divf %110, %111 : vector<1x128xf32>
    %113 = vector.broadcast %112 : vector<1x128xf32> to vector<2x128xf32>
    %114 = arith.subf %65, %113 : vector<2x128xf32>
    %115 = arith.mulf %114, %114 : vector<2x128xf32>
    %cst_42 = arith.constant dense<0.000000e+00> : vector<128xf32>
    %116 = vector.multi_reduction <add>, %115, %cst_42 [0] : vector<2x128xf32> to vector<128xf32>
    %117 = vector.shape_cast %116 : vector<128xf32> to vector<1x128xf32>
    %cst_43 = arith.constant 2.000000e+00 : f32
    %118 = vector.broadcast %cst_43 : f32 to vector<1x128xf32>
    %119 = arith.divf %117, %118 : vector<1x128xf32>
    %120 = vector.broadcast %112 : vector<1x128xf32> to vector<2x128xf32>
    %121 = arith.subf %65, %120 : vector<2x128xf32>
    %cst_44 = arith.constant 9.99999974E-6 : f32
    %122 = vector.broadcast %cst_44 : f32 to vector<1x128xf32>
    %123 = arith.addf %119, %122 : vector<1x128xf32>
    %124 = math.rsqrt %123 : vector<1x128xf32>
    %125 = vector.broadcast %124 : vector<1x128xf32> to vector<2x128xf32>
    %126 = arith.mulf %121, %125 : vector<2x128xf32>
    %127 = vector.broadcast %6 : vector<1x128xf32> to vector<2x128xf32>
    %128 = arith.mulf %126, %127 : vector<2x128xf32>
    %129 = vector.broadcast %7 : vector<1x128xf32> to vector<2x128xf32>
    %130 = arith.addf %128, %129 : vector<2x128xf32>
    %cst_45 = arith.constant dense<0.000000e+00> : vector<128xf32>
    %131 = vector.multi_reduction <add>, %86, %cst_45 [0] : vector<2x128xf32> to vector<128xf32>
    %132 = vector.shape_cast %131 : vector<128xf32> to vector<1x128xf32>
    %cst_46 = arith.constant 2.000000e+00 : f32
    %133 = vector.broadcast %cst_46 : f32 to vector<1x128xf32>
    %134 = arith.divf %132, %133 : vector<1x128xf32>
    %135 = vector.broadcast %134 : vector<1x128xf32> to vector<2x128xf32>
    %136 = arith.subf %86, %135 : vector<2x128xf32>
    %137 = arith.mulf %136, %136 : vector<2x128xf32>
    %cst_47 = arith.constant dense<0.000000e+00> : vector<128xf32>
    %138 = vector.multi_reduction <add>, %137, %cst_47 [0] : vector<2x128xf32> to vector<128xf32>
    %139 = vector.shape_cast %138 : vector<128xf32> to vector<1x128xf32>
    %cst_48 = arith.constant 2.000000e+00 : f32
    %140 = vector.broadcast %cst_48 : f32 to vector<1x128xf32>
    %141 = arith.divf %139, %140 : vector<1x128xf32>
    %142 = vector.broadcast %134 : vector<1x128xf32> to vector<2x128xf32>
    %143 = arith.subf %86, %142 : vector<2x128xf32>
    %cst_49 = arith.constant 9.99999974E-6 : f32
    %144 = vector.broadcast %cst_49 : f32 to vector<1x128xf32>
    %145 = arith.addf %141, %144 : vector<1x128xf32>
    %146 = math.rsqrt %145 : vector<1x128xf32>
    %147 = vector.broadcast %146 : vector<1x128xf32> to vector<2x128xf32>
    %148 = arith.mulf %143, %147 : vector<2x128xf32>
    %149 = vector.broadcast %6 : vector<1x128xf32> to vector<2x128xf32>
    %150 = arith.mulf %148, %149 : vector<2x128xf32>
    %151 = vector.broadcast %7 : vector<1x128xf32> to vector<2x128xf32>
    %152 = arith.addf %150, %151 : vector<2x128xf32>
    %153 = tpu.concatenate %108, %130, %152 in 0 : vector<2x128xf32>, vector<2x128xf32>, vector<2x128xf32> -> vector<6x128xf32>
    %154 = arith.truncf %153 : vector<6x128xf32> to vector<6x128xbf16>
    %cst_50 = arith.constant dense<0.000000e+00> : vector<6x128xf32>
    %155 = tpu.matmul %154, %15, %cst_50 {dimension_numbers = #tpu.dot_dimension_numbers<[1], [0], [0], [1], [0, 0, 1, 1], [], []>} : vector<6x128xbf16>, vector<128x128xbf16>, vector<6x128xf32> -> vector<6x128xf32>
    %156 = vector.broadcast %8 : vector<1x128xf32> to vector<6x128xf32>
    %157 = arith.addf %155, %156 : vector<6x128xf32>
    %158 = vector.extract_strided_slice %157 {offsets = [0, 0], sizes = [2, 128], strides = [1, 1]} : vector<6x128xf32> to vector<2x128xf32>
    %cst_51 = arith.constant dense<0.000000e+00> : vector<128xf32>
    %159 = vector.multi_reduction <add>, %158, %cst_51 [0] : vector<2x128xf32> to vector<128xf32>
    %160 = vector.shape_cast %159 : vector<128xf32> to vector<1x128xf32>
    %cst_52 = arith.constant 2.000000e+00 : f32
    %161 = vector.broadcast %cst_52 : f32 to vector<1x128xf32>
    %162 = arith.divf %160, %161 : vector<1x128xf32>
    %163 = vector.broadcast %162 : vector<1x128xf32> to vector<2x128xf32>
    %164 = arith.subf %158, %163 : vector<2x128xf32>
    %165 = arith.mulf %164, %164 : vector<2x128xf32>
    %cst_53 = arith.constant dense<0.000000e+00> : vector<128xf32>
    %166 = vector.multi_reduction <add>, %165, %cst_53 [0] : vector<2x128xf32> to vector<128xf32>
    %167 = vector.shape_cast %166 : vector<128xf32> to vector<1x128xf32>
    %cst_54 = arith.constant 2.000000e+00 : f32
    %168 = vector.broadcast %cst_54 : f32 to vector<1x128xf32>
    %169 = arith.divf %167, %168 : vector<1x128xf32>
    %170 = vector.broadcast %162 : vector<1x128xf32> to vector<2x128xf32>
    %171 = arith.subf %158, %170 : vector<2x128xf32>
    %cst_55 = arith.constant 9.99999974E-6 : f32
    %172 = vector.broadcast %cst_55 : f32 to vector<1x128xf32>
    %173 = arith.addf %169, %172 : vector<1x128xf32>
    %174 = math.rsqrt %173 : vector<1x128xf32>
    %175 = vector.broadcast %174 : vector<1x128xf32> to vector<2x128xf32>
    %176 = arith.mulf %171, %175 : vector<2x128xf32>
    %177 = vector.broadcast %9 : vector<1x128xf32> to vector<2x128xf32>
    %178 = arith.mulf %176, %177 : vector<2x128xf32>
    %179 = vector.broadcast %10 : vector<1x128xf32> to vector<2x128xf32>
    %180 = arith.addf %178, %179 : vector<2x128xf32>
    %cst_56 = arith.constant 0.000000e+00 : f32
    %181 = vector.broadcast %cst_56 : f32 to vector<2x128xf32>
    %182 = arith.cmpf ogt, %180, %181 : vector<2x128xf32>
    %cst_57 = arith.constant 0.000000e+00 : f32
    %183 = vector.broadcast %cst_57 : f32 to vector<2x128xf32>
    %184 = arith.minimumf %180, %183 : vector<2x128xf32>
    %185 = math.exp %184 : vector<2x128xf32>
    %cst_58 = arith.constant 1.000000e+00 : f32
    %186 = vector.broadcast %cst_58 : f32 to vector<2x128xf32>
    %187 = arith.subf %185, %186 : vector<2x128xf32>
    %188 = arith.select %182, %180, %187 : vector<2x128xi1>, vector<2x128xf32>
    %189 = vector.extract_strided_slice %157 {offsets = [2, 0], sizes = [2, 128], strides = [1, 1]} : vector<6x128xf32> to vector<2x128xf32>
    %cst_59 = arith.constant dense<0.000000e+00> : vector<128xf32>
    %190 = vector.multi_reduction <add>, %189, %cst_59 [0] : vector<2x128xf32> to vector<128xf32>
    %191 = vector.shape_cast %190 : vector<128xf32> to vector<1x128xf32>
    %cst_60 = arith.constant 2.000000e+00 : f32
    %192 = vector.broadcast %cst_60 : f32 to vector<1x128xf32>
    %193 = arith.divf %191, %192 : vector<1x128xf32>
    %194 = vector.broadcast %193 : vector<1x128xf32> to vector<2x128xf32>
    %195 = arith.subf %189, %194 : vector<2x128xf32>
    %196 = arith.mulf %195, %195 : vector<2x128xf32>
    %cst_61 = arith.constant dense<0.000000e+00> : vector<128xf32>
    %197 = vector.multi_reduction <add>, %196, %cst_61 [0] : vector<2x128xf32> to vector<128xf32>
    %198 = vector.shape_cast %197 : vector<128xf32> to vector<1x128xf32>
    %cst_62 = arith.constant 2.000000e+00 : f32
    %199 = vector.broadcast %cst_62 : f32 to vector<1x128xf32>
    %200 = arith.divf %198, %199 : vector<1x128xf32>
    %201 = vector.broadcast %193 : vector<1x128xf32> to vector<2x128xf32>
    %202 = arith.subf %189, %201 : vector<2x128xf32>
    %cst_63 = arith.constant 9.99999974E-6 : f32
    %203 = vector.broadcast %cst_63 : f32 to vector<1x128xf32>
    %204 = arith.addf %200, %203 : vector<1x128xf32>
    %205 = math.rsqrt %204 : vector<1x128xf32>
    %206 = vector.broadcast %205 : vector<1x128xf32> to vector<2x128xf32>
    %207 = arith.mulf %202, %206 : vector<2x128xf32>
    %208 = vector.broadcast %9 : vector<1x128xf32> to vector<2x128xf32>
    %209 = arith.mulf %207, %208 : vector<2x128xf32>
    %210 = vector.broadcast %10 : vector<1x128xf32> to vector<2x128xf32>
    %211 = arith.addf %209, %210 : vector<2x128xf32>
    %cst_64 = arith.constant 0.000000e+00 : f32
    %212 = vector.broadcast %cst_64 : f32 to vector<2x128xf32>
    %213 = arith.cmpf ogt, %211, %212 : vector<2x128xf32>
    %cst_65 = arith.constant 0.000000e+00 : f32
    %214 = vector.broadcast %cst_65 : f32 to vector<2x128xf32>
    %215 = arith.minimumf %211, %214 : vector<2x128xf32>
    %216 = math.exp %215 : vector<2x128xf32>
    %cst_66 = arith.constant 1.000000e+00 : f32
    %217 = vector.broadcast %cst_66 : f32 to vector<2x128xf32>
    %218 = arith.subf %216, %217 : vector<2x128xf32>
    %219 = arith.select %213, %211, %218 : vector<2x128xi1>, vector<2x128xf32>
    %220 = vector.extract_strided_slice %157 {offsets = [4, 0], sizes = [2, 128], strides = [1, 1]} : vector<6x128xf32> to vector<2x128xf32>
    %cst_67 = arith.constant dense<0.000000e+00> : vector<128xf32>
    %221 = vector.multi_reduction <add>, %220, %cst_67 [0] : vector<2x128xf32> to vector<128xf32>
    %222 = vector.shape_cast %221 : vector<128xf32> to vector<1x128xf32>
    %cst_68 = arith.constant 2.000000e+00 : f32
    %223 = vector.broadcast %cst_68 : f32 to vector<1x128xf32>
    %224 = arith.divf %222, %223 : vector<1x128xf32>
    %225 = vector.broadcast %224 : vector<1x128xf32> to vector<2x128xf32>
    %226 = arith.subf %220, %225 : vector<2x128xf32>
    %227 = arith.mulf %226, %226 : vector<2x128xf32>
    %cst_69 = arith.constant dense<0.000000e+00> : vector<128xf32>
    %228 = vector.multi_reduction <add>, %227, %cst_69 [0] : vector<2x128xf32> to vector<128xf32>
    %229 = vector.shape_cast %228 : vector<128xf32> to vector<1x128xf32>
    %cst_70 = arith.constant 2.000000e+00 : f32
    %230 = vector.broadcast %cst_70 : f32 to vector<1x128xf32>
    %231 = arith.divf %229, %230 : vector<1x128xf32>
    %232 = vector.broadcast %224 : vector<1x128xf32> to vector<2x128xf32>
    %233 = arith.subf %220, %232 : vector<2x128xf32>
    %cst_71 = arith.constant 9.99999974E-6 : f32
    %234 = vector.broadcast %cst_71 : f32 to vector<1x128xf32>
    %235 = arith.addf %231, %234 : vector<1x128xf32>
    %236 = math.rsqrt %235 : vector<1x128xf32>
    %237 = vector.broadcast %236 : vector<1x128xf32> to vector<2x128xf32>
    %238 = arith.mulf %233, %237 : vector<2x128xf32>
    %239 = vector.broadcast %9 : vector<1x128xf32> to vector<2x128xf32>
    %240 = arith.mulf %238, %239 : vector<2x128xf32>
    %241 = vector.broadcast %10 : vector<1x128xf32> to vector<2x128xf32>
    %242 = arith.addf %240, %241 : vector<2x128xf32>
    %cst_72 = arith.constant 0.000000e+00 : f32
    %243 = vector.broadcast %cst_72 : f32 to vector<2x128xf32>
    %244 = arith.cmpf ogt, %242, %243 : vector<2x128xf32>
    %cst_73 = arith.constant 0.000000e+00 : f32
    %245 = vector.broadcast %cst_73 : f32 to vector<2x128xf32>
    %246 = arith.minimumf %242, %245 : vector<2x128xf32>
    %247 = math.exp %246 : vector<2x128xf32>
    %cst_74 = arith.constant 1.000000e+00 : f32
    %248 = vector.broadcast %cst_74 : f32 to vector<2x128xf32>
    %249 = arith.subf %247, %248 : vector<2x128xf32>
    %250 = arith.select %244, %242, %249 : vector<2x128xi1>, vector<2x128xf32>
    %251 = tpu.concatenate %188, %219, %250 in 0 : vector<2x128xf32>, vector<2x128xf32>, vector<2x128xf32> -> vector<6x128xf32>
    %252 = arith.truncf %251 : vector<6x128xf32> to vector<6x128xbf16>
    %cst_75 = arith.constant dense<0.000000e+00> : vector<6x128xf32>
    %253 = tpu.matmul %252, %17, %cst_75 {dimension_numbers = #tpu.dot_dimension_numbers<[1], [0], [0], [1], [0, 0, 1, 1], [], []>} : vector<6x128xbf16>, vector<128x128xbf16>, vector<6x128xf32> -> vector<6x128xf32>
    %254 = vector.broadcast %11 : vector<1x128xf32> to vector<6x128xf32>
    %255 = arith.addf %253, %254 : vector<6x128xf32>
    %cst_76 = arith.constant 0.000000e+00 : f32
    %256 = vector.broadcast %cst_76 : f32 to vector<2x128xf32>
    %257 = vector.extract_strided_slice %255 {offsets = [0, 0], sizes = [2, 128], strides = [1, 1]} : vector<6x128xf32> to vector<2x128xf32>
    %258 = arith.addf %256, %257 : vector<2x128xf32>
    %259 = vector.extract_strided_slice %255 {offsets = [2, 0], sizes = [2, 128], strides = [1, 1]} : vector<6x128xf32> to vector<2x128xf32>
    %260 = arith.addf %258, %259 : vector<2x128xf32>
    %261 = vector.extract_strided_slice %255 {offsets = [4, 0], sizes = [2, 128], strides = [1, 1]} : vector<6x128xf32> to vector<2x128xf32>
    %262 = arith.addf %260, %261 : vector<2x128xf32>
    %c0_77 = arith.constant 0 : index
    %c0_78 = arith.constant 0 : index
    %263 = vector.load %arg4[%c0_77, %c0_78] : memref<2x128xf32, #tpu.memory_space<vmem>>, vector<2x128xf32>
    tpu.vector_store %arg4[%c0_77, %c0_78], %262 {strides = array<i32>} : memref<2x128xf32, #tpu.memory_space<vmem>>, vector<2x128xf32>,
    return
  }
}

</mosaic_0001>

<bundles_post_ra>
// kernel: pca_model_forward.1
= control target key start
LH: loop header
LB: loop body
LE: loop exit
PB: predicated region body
PF: predicated region fallthrough
CT: control target
= control target key end

     0   :  { %vm43_vm0 = vcmask 1043456   ;;  %v1229_v9 = vmov 0.0   ;;  %s1541_s0 = inlined_call_operand.vmem [shape: f32[6,4,256], index: 0, kind: input, shape index: {}]   ;;  %s1542_s1 = inlined_call_operand.vmem [shape: f32[4,128], index: 1, kind: input, shape index: {}]   ;;  %s1543_s2 = inlined_call_operand.vmem [shape: f32[8,128], index: 2, kind: input, shape index: {}]   ;;  %s1544_s3 = inlined_call_operand.vmem [shape: bf16[3,128,128], index: 3, kind: input, shape index: {}]   ;;  %s1545_s4 = inlined_call_operand.hbm [shape: f32[2,128], index: 4, kind: output, shape index: {}]  }
   0x1   :  { %v19_v0 = vld [vmem:[%s1541_s0] sm:$0xff]  ;;  %v21_v1 = vld [vmem:[%s1541_s0 + $0x10] sm:$0xff]  ;;  %v20_v2 = vld [vmem:[%s1541_s0 + $0x8] sm:$0xff]  ;;  %1032 = vmatprep.subr.bf16.mxu1 %v1229_v9  ;;  %1027 = vmatprep.subr.mxu0 %v1229_v9 }
   0x2   :  { %v31_v3 = vcombine.high %v19_v0, %v19_v0  ;;  %v44_v4 = vsel %vm43_vm0, %v19_v0, 0.0  ;;  %v33_v5 = vcombine.high %v21_v1, %v21_v1  ;;  %v54_v6 = vsel %vm43_vm0, %v21_v1, 0.0  ;;  %v22_v7 = vld [vmem:[%s1541_s0 + $0x18] sm:$0xff]  ;;  %v23_v8 = vld [vmem:[%s1541_s0 + $0x20] sm:$0xff]  ;;  %v24_v13 = vld [vmem:[%s1541_s0 + $0x28] sm:$0xff] }
   0x3   :  { %v32_v10 = vcombine.high %v20_v2, %v20_v2  ;;  %v49_v11 = vsel %vm43_vm0, %v20_v2, 0.0  ;;  %v34_v12 = vcombine.high %v22_v7, %v22_v7  ;;  %v59_v16 = vsel %vm43_vm0, %v22_v7, 0.0  ;;  %v1290_v18 = vld [vmem:[%s1544_s3] sm:$0xff]   ;;  %v1298_v24 = vld [vmem:[%s1544_s3 + $0x8] sm:$0xff]   ;;  %v1308_v31 = vld [vmem:[%s1544_s3 + $0x10] sm:$0xff]  }
   0x4   :  { %v45_v14 = vsel %vm43_vm0, %v31_v3, 0.0  ;;  %v55_v15 = vsel %vm43_vm0, %v33_v5, 0.0  ;;  %v35_v17 = vcombine.high %v23_v8, %v23_v8  ;;  %v36_v23 = vcombine.high %v24_v13, %v24_v13  ;;  %1033 = vmatpush3.bf16.msra.mxu1 %v1290_v18  ;;  %v1315_v34 = vld [vmem:[%s1544_s3 + $0x18] sm:$0xff]   ;;  %v1322_v35 = vld [vmem:[%s1544_s3 + $0x20] sm:$0xff]   ;;  %v1330_v36 = vld [vmem:[%s1544_s3 + $0x28] sm:$0xff]  }
   0x5   :  { %v46_v19 = vadd.f32 %v45_v14, %v44_v4  ;;  %v56_v20 = vadd.f32 %v55_v15, %v54_v6  ;;  %v50_v21 = vsel %vm43_vm0, %v32_v10, 0.0  ;;  %v60_v22 = vsel %vm43_vm0, %v34_v12, 0.0  ;;  %1034 = vmatprep.subr.bf16.mxu1 %v1229_v9 }
   0x6   :  { %v51_v25 = vadd.f32 %v50_v21, %v49_v11  ;;  %v61_v26 = vadd.f32 %v60_v22, %v59_v16  ;;  %v64_v27 = vsel %vm43_vm0, %v23_v8, 0.0  ;;  %v65_v28 = vsel %vm43_vm0, %v35_v17, 0.0 }
   0x7   :  { %47 = vadd.xlane.f32.xlu0 %v46_v19  ;;  %57 = vadd.xlane.f32.xlu1 %v56_v20  ;;  %v69_v29 = vsel %vm43_vm0, %v24_v13, 0.0  ;;  %v70_v30 = vsel %vm43_vm0, %v36_v23, 0.0  ;;  %v66_v32 = vadd.f32 %v65_v28, %v64_v27 }
   0x8   :  { %1035 = vmatpush3.bf16.msra.mxu1 %v1298_v24  ;;  %v71_v33 = vadd.f32 %v70_v30, %v69_v29 }
   0x9   :  { %1036 = vmatprep.subr.bf16.mxu1 %v1229_v9 }
   0xb   :  { %52 = vadd.xlane.f32.xlu0 %v51_v25  ;;  %62 = vadd.xlane.f32.xlu1 %v61_v26 }
   0xc   :  { %1037 = vmatpush3.bf16.msra.mxu1 %v1308_v31 }
   0xd   :  { %1038 = vmatprep.subr.bf16.mxu1 %v1229_v9 }
   0xf   :  { %67 = vadd.xlane.f32.xlu0 %v66_v32  ;;  %72 = vadd.xlane.f32.xlu1 %v71_v33 }
  0x10   :  { %1039 = vmatpush3.bf16.msra.mxu1 %v1315_v34 }
  0x11   :  { %1040 = vmatprep.subr.bf16.mxu1 %v1229_v9 }
  0x14   :  { %1041 = vmatpush3.bf16.msra.mxu1 %v1322_v35 }
  0x15   :  { %9 = vsyncpa [#allocation3], 0  ;;  %1042 = vmatprep.subr.bf16.mxu1 %v1229_v9  ;;  %v1337_v37 = vld [vmem:[%s1544_s3 + $0x30] sm:$0xff]   ;;  %v1344_v38 = vld [vmem:[%s1544_s3 + $0x38] sm:$0xff]   ;;  %vm1230_vm1 = vmmov 0   ;;  %v1231_v40 = vmov 0   ;;  %v133_v41 = vlaneseq }
  0x16   :  { %v132_v39 = vld [vmem:[%s1542_s1] sm:$0xf]  ;;  %1048 = vmatprep.mubr.msk.bf16.mxu1 %vm1230_vm1, %v1229_v9  ;;  %1029 = vmatprep.mubr.msk.f32.mxu0 %vm1230_vm1, %v1229_v9  ;;  %vm169_vm2 = vcmask 1041409   ;;  %vm171_vm3 = vcmask 1042434   ;;  %vm173_vm4 = vcmask 1043459   ;;  %vm175_vm5 = vcmask 1044484  }
  0x17   :  { %1028 = vmatpush3.msk.msra.mxu0 %vm43_vm0, %v132_v39  ;;  %v1376_v42 = vshrl.u32 %v133_v41, 7  ;;  %v144_v43 = vand.u32 127, %v133_v41  ;;  %vm177_vm6 = vcmask 1045509   ;;  %vm179_vm7 = vcmask 31744   ;;  %v1401_v10 = vld [vmem:[%s1543_s2] sm:$0xff]  ;;  %s1232_s19 = smov 96  }
  0x18   :  { %1043 = vmatpush3.bf16.msra.mxu1 %v1330_v36  ;;  %1052 = vmatprep.subr.bf16.mxu0 %v1229_v9  ;;  %s1233_s20 = smov 64   ;;  %s1234_s2 = smov 32   ;;  %vm509_vm8 = vcmask 1041408  }
  0x19   :  { %1044 = vmatprep.subr.bf16.mxu1 %v1229_v9  ;;  %v147_v46 = vsub.s32 %v144_v43, %v1376_v42  ;;  %v135_v8 = vsub.s32 0, %v1376_v42 }
  0x1b   :  { %v136_v11 = vrot.slane %v1401_v10, %v135_v8 }
  0x1c   :  { %1045 = vmatpush3.bf16.msra.mxu1 %v1337_v37 }
  0x1d   :  { %1046 = vmatprep.subr.bf16.mxu1 %v1229_v9 }
  0x20   :  { %1047 = vmatpush3.bf16.msra.mxu1 %v1344_v38 }
  0x21   :  { %1072 = vmatprep.subr.bf16.mxu1 %v1229_v9 }
  0x23   :  { %1049 = vmatmul.mubr.bf16.vlgmr.msra.gmra.mrb[0].mxu1 %v1231_v40 }
  0x24   :  { %1073 = vmatpush3.bf16.msra.mxu1 %v1290_v18  ;;  %1088 = vmatprep.mubr.msk.bf16.mxu1 %vm1230_vm1, %v1229_v9 }
  0x25   :  { %1074 = vmatprep.subr.bf16.mxu1 %v1229_v9 }
  0x28   :  { %1075 = vmatpush3.bf16.msra.mxu1 %v1298_v24 }
  0x29   :  { %1076 = vmatprep.subr.bf16.mxu1 %v1229_v9 }
  0x2c   :  { %1077 = vmatpush3.bf16.msra.mxu1 %v1308_v31 }
  0x2d   :  { %1078 = vmatprep.subr.bf16.mxu1 %v1229_v9 }
  0x30   :  { %1079 = vmatpush3.bf16.msra.mxu1 %v1315_v34 }
  0x31   :  { %1080 = vmatprep.subr.bf16.mxu1 %v1229_v9 }
  0x34   :  { %1081 = vmatpush3.bf16.msra.mxu1 %v1322_v35 }
  0x35   :  { %1082 = vmatprep.subr.bf16.mxu1 %v1229_v9 }
  0x38   :  { %1083 = vmatpush3.bf16.msra.mxu1 %v1330_v36 }
  0x39   :  { %1084 = vmatprep.subr.bf16.mxu1 %v1229_v9 }
  0x3c   :  { %1085 = vmatpush3.bf16.msra.mxu1 %v1337_v37 }
  0x3d   :  { %1086 = vmatprep.subr.bf16.mxu1 %v1229_v9 }
  0x40   :  { %1087 = vmatpush3.bf16.msra.mxu1 %v1344_v38 }
  0x41   :  { %1112 = vmatprep.subr.bf16.mxu1 %v1229_v9 }
  0x94   :  { %v48_v44 = vpop.xlane.xlu0 %47  ;;  %v58_v45 = vpop.xlane.xlu1 %57 }
  0x95   :  { %v75_v47 = vmul.f32 0.00390625, %v48_v44  ;;  %v77_v48 = vmul.f32 0.00390625, %v58_v45 }
  0x97   :  { %v148_v53 = vrot.slane %v75_v47, %v147_v46  ;;  %v156_v56 = vrot.slane %v77_v48, %v147_v46 }
  0x98   :  { %v53_v49 = vpop.xlane.xlu0 %52  ;;  %v63_v50 = vpop.xlane.xlu1 %62 }
  0x99   :  { %v76_v51 = vmul.f32 0.00390625, %v53_v49  ;;  %v78_v52 = vmul.f32 0.00390625, %v63_v50 }
  0x9b   :  { %v152_v54 = vrot.slane %v76_v51, %v147_v46  ;;  %v160_v55 = vrot.slane %v78_v52, %v147_v46 }
  0x9c   :  { %v68_v57 = vpop.xlane.xlu0 %67  ;;  %v73_v58 = vpop.xlane.xlu1 %72 }
  0x9d   :  { %v170_v59 = vsel %vm169_vm2, %v152_v54, %v148_v53  ;;  %v79_v60 = vmul.f32 0.00390625, %v68_v57  ;;  %v80_v61 = vmul.f32 0.00390625, %v73_v58 }
  0x9e   :  { %v172_v62 = vsel %vm171_vm3, %v156_v56, %v170_v59 }
  0x9f   :  { %v174_v63 = vsel %vm173_vm4, %v160_v55, %v172_v62  ;;  %v164_v0 = vrot.slane %v79_v60, %v147_v46  ;;  %v168_v1 = vrot.slane %v80_v61, %v147_v46 }
  0xa1   :  { %v176_v2 = vsel %vm175_vm5, %v164_v0, %v174_v63 }
  0xa2   :  { %v178_v3 = vsel %vm177_vm6, %v168_v1, %v176_v2 }
  0xa3   :  { %1030 = vmatmul.mubr.msk.f32.vlgmr.msra.gmra.mrb[0].mxu0 %vm179_vm7, %v178_v3 }
  0xa4   :  { %1053 = vmatpush3.bf16.msra.mxu0 %v1290_v18  ;;  %1068 = vmatprep.mubr.msk.bf16.mxu0 %vm1230_vm1, %v1229_v9 }
  0xa5   :  { %1054 = vmatprep.subr.bf16.mxu0 %v1229_v9 }
  0xa8   :  { %1055 = vmatpush3.bf16.msra.mxu0 %v1298_v24 }
  0xa9   :  { %1056 = vmatprep.subr.bf16.mxu0 %v1229_v9 }
  0xac   :  { %1057 = vmatpush3.bf16.msra.mxu0 %v1308_v31 }
  0xad   :  { %1058 = vmatprep.subr.bf16.mxu0 %v1229_v9 }
  0xb0   :  { %1059 = vmatpush3.bf16.msra.mxu0 %v1315_v34 }
  0xb1   :  { %1060 = vmatprep.subr.bf16.mxu0 %v1229_v9 }
  0xb4   :  { %1061 = vmatpush3.bf16.msra.mxu0 %v1322_v35 }
  0xb5   :  { %1062 = vmatprep.subr.bf16.mxu0 %v1229_v9 }
  0xb8   :  { %1063 = vmatpush3.bf16.msra.mxu0 %v1330_v36 }
  0xb9   :  { %1064 = vmatprep.subr.bf16.mxu0 %v1229_v9 }
  0xbc   :  { %1065 = vmatpush3.bf16.msra.mxu0 %v1337_v37 }
  0xbd   :  { %1066 = vmatprep.subr.bf16.mxu0 %v1229_v9 }
  0xc0   :  { %1067 = vmatpush3.bf16.msra.mxu0 %v1344_v38 }
  0xc1   :  { %1092 = vmatprep.subr.bf16.mxu0 %v1229_v9 }
  0xf6   :  { %v337_v4 = vpop.f32.mrb[0].mxu1 }
  0xf7   :  { %v1050_v5 = vpop.f32.mrb[1].mxu1 }
  0xf8   :  { %v340_v6 = vpop.f32.mrb[2].mxu1 }
  0xf9   :  { %v1051_v7 = vpop.f32.mrb[3].mxu1 }
 0x176   :  { %v251_v12 = vpop.f32.mrb[0].mxu0 }
 0x177   :  { %v1404_v13 = vadd.f32 %v251_v12, %v136_v11  ;;  %v1031_v14 = vpop.f32.mrb[1].mxu0 }
 0x179   :  { %v343_v15 = vadd.f32 %v337_v4, %v1404_v13 }
 0x17b   :  { %v955_v16 = vmul.f32 -1.442695, %v343_v15 }
 0x17d   :  { %1169 = vpow2.f32 %v955_v16 }
 0x187   :  { %v1170_v17 = vpop.eup %1169 }
 0x188   :  { %v347_v18 = vadd.f32 1.0, %v1170_v17 }
 0x18a   :  { %1171 = vrcp.f32 %v347_v18 }
 0x194   :  { %v1172_v19 = vpop.eup %1171 }
 0x195   :  { %350 = vrot.lane.b32.xlu1 %v1172_v19, %s1232_s19  ;;  %352 = vrot.lane.b32.xlu0 %v1172_v19, %s1233_s20 }
 0x199   :  { %356 = vrot.lane.b32.xlu1 %v1172_v19, %s1234_s2 }
 0x207   :  { %v353_v20 = vpop.permute.xlu0 %352  ;;  %v351_v22 = vpop.permute.xlu1 %350 }
 0x208   :  { %v354_v21 = vmul.f32 2.0, %v353_v20  ;;  %v358_v24 = vmul.f32 0.0, %v351_v22 }
 0x20a   :  { %v956_v23 = vadd.f32 -1.0, %v354_v21 }
 0x20b   :  { %v357_v28 = vpop.permute.xlu1 %356 }
 0x20c   :  { %v359_v25 = vmul.f32 %v1172_v19, %v956_v23 }
 0x20e   :  { %v360_v26 = vadd.f32 %v359_v25, %v358_v24 }
 0x210   :  { %1173 = vtanh.f32 %v360_v26 }
 0x21a   :  { %v1174_v27 = vpop.eup %1173 }
 0x21b   :  { %v362_v29 = vmul.f32 %v1174_v27, %v357_v28 }
 0x21d   :  { %v363_v30 = vpack.c.bf16 %v362_v29, %v362_v29  ;;  %v510_v43 = vsel %vm509_vm8, %v362_v29, 0.0 }
 0x21e   :  { %v511_v44 = vrot.slane %v510_v43, 4 }
 0x21f   :  { %1069 = vmatmul.mubr.bf16.vlgmr.msra.gmra.mrb[4].mxu0 %v363_v30 }
 0x220   :  { %1108 = vmatprep.mubr.msk.bf16.mxu0 %vm1230_vm1, %v1229_v9  ;;  %v512_v45 = vadd.f32 %v511_v44, %v510_v43 }
 0x222   :  { %v513_v46 = vrot.slane %v512_v45, 2 }
 0x224   :  { %v514_v47 = vadd.f32 %v513_v46, %v512_v45 }
 0x226   :  { %v515_v50 = vrot.slane %v514_v47, 1 }
 0x228   :  { %v516_v54 = vadd.f32 %v515_v50, %v514_v47 }
 0x22a   :  { %v518_v58 = vmul.f32 0.5, %v516_v54 }
 0x22c   :  { %v519_v60 = vsub.f32 %v362_v29, %v518_v58 }
 0x22e   :  { %v520_v61 = vmul.f32 %v519_v60, %v519_v60 }
 0x230   :  { %v521_v63 = vsel %vm509_vm8, %v520_v61, 0.0  ;;  %v1155_v61 = vld [vmem:[%s1544_s3 + $0x50] sm:$0xff]  }
 0x231   :  { %v522_v2 = vrot.slane %v521_v63, 4 }
 0x233   :  { %v523_v7 = vadd.f32 %v522_v2, %v521_v63  ;;  %v1157_v63 = vld [vmem:[%s1544_s3 + $0x60] sm:$0xff]   ;;  %v1160_v2 = vld [vmem:[%s1544_s3 + $0x78] sm:$0xff]  }
 0x235   :  { %v524_v12 = vrot.slane %v523_v7, 2 }
 0x237   :  { %v525_v16 = vadd.f32 %v524_v12, %v523_v7 }
 0x239   :  { %v526_v19 = vrot.slane %v525_v16, 1 }
 0x23b   :  { %v527_v22 = vadd.f32 %v526_v19, %v525_v16 }
 0x23d   :  { %v528_v25 = vmul.f32 0.5, %v527_v22 }
 0x23f   :  { %v529_v28 = vadd.f32 1e-05, %v528_v25 }
 0x2f2   :  { %v398_v31 = vpop.f32.mrb[4].mxu0 }
 0x2f3   :  { %v405_v32 = vrot.slane %v398_v31, 6  ;;  %v1070_v33 = vpop.f32.mrb[5].mxu0 }
 0x2f4   :  { %v401_v34 = vpop.f32.mrb[6].mxu0  ;;  %v534_v33 = vsub.s32 1, %v1376_v42 }
 0x2f5   :  { %v407_v35 = vadd.f32 %v405_v32, %v1404_v13  ;;  %v1071_v36 = vpop.f32.mrb[7].mxu0 }
 0x2f6   :  { %v539_v36 = vsub.s32 2, %v1376_v42 }
 0x2f7   :  { %v957_v37 = vmul.f32 -1.442695, %v407_v35  ;;  %v1427_v35 = vrot.slane %v1401_v10, %v534_v33 }
 0x2f9   :  { %1175 = vpow2.f32 %v957_v37 }
 0x303   :  { %v1176_v38 = vpop.eup %1175 }
 0x304   :  { %v411_v39 = vadd.f32 1.0, %v1176_v38 }
 0x306   :  { %1177 = vrcp.f32 %v411_v39 }
 0x310   :  { %v1178_v40 = vpop.eup %1177 }
 0x311   :  { %v415_v41 = vrot.slane %v1178_v40, 2 }
 0x313   :  { %417 = vrot.lane.b32.xlu0 %v415_v41, %s1232_s19  ;;  %419 = vrot.lane.b32.xlu1 %v415_v41, %s1233_s20 }
 0x317   :  { %423 = vrot.lane.b32.xlu1 %v415_v41, %s1234_s2 }
 0x385   :  { %v420_v48 = vpop.permute.xlu1 %419  ;;  %v418_v53 = vpop.permute.xlu0 %417 }
 0x386   :  { %v421_v49 = vmul.f32 2.0, %v420_v48  ;;  %v425_v56 = vmul.f32 %v418_v53, %v360_v26 }
 0x388   :  { %v958_v51 = vadd.f32 -1.0, %v421_v49 }
 0x389   :  { %v424_v0 = vpop.permute.xlu1 %423 }
 0x38a   :  { %v427_v52 = vrot.slane %v958_v51, 6 }
 0x38c   :  { %v429_v55 = vmul.f32 %v1178_v40, %v427_v52  ;;  %v1431_v40 = vrot.slane %v1401_v10, %v539_v36 }
 0x38e   :  { %v431_v57 = vrot.slane %v429_v55, 2 }
 0x390   :  { %v1417_v59 = vadd.f32 %v431_v57, %v425_v56 }
 0x392   :  { %1179 = vtanh.f32 %v1417_v59 }
 0x393   :  { %1181 = vrsqrt.f32 %v529_v28 }
 0x39c   :  { %v1180_v62 = vpop.eup %1179 }
 0x39d   :  { %v435_v1 = vmul.f32 %v1180_v62, %v424_v0  ;;  %v1182_v34 = vpop.eup %1181  ;;  %v1156_v62 = vld [vmem:[%s1544_s3 + $0x58] sm:$0xff]   ;;  %v1158_v0 = vld [vmem:[%s1544_s3 + $0x68] sm:$0xff]  }
 0x39e   :  { %v531_v37 = vmul.f32 %v1182_v34, %v519_v60  ;;  %v1153_v60 = vld [vmem:[%s1544_s3 + $0x40] sm:$0xff]  }
 0x39f   :  { %v436_v3 = vpack.c.bf16 %v435_v1, %v435_v1  ;;  %v542_v4 = vsel %vm509_vm8, %v435_v1, 0.0  ;;  %1093 = vmatpush3.bf16.msra.mxu0 %v1153_v60 }
 0x3a0   :  { %v543_v5 = vrot.slane %v542_v4, 4  ;;  %v536_v41 = vmul.f32 %v1427_v35, %v531_v37  ;;  %1094 = vmatprep.subr.bf16.mxu0 %v1229_v9 }
 0x3a1   :  { %1089 = vmatmul.mubr.bf16.vlgmr.msra.gmra.mrb[4].mxu1 %v436_v3 }
 0x3a2   :  { %v544_v6 = vadd.f32 %v543_v5, %v542_v4  ;;  %1128 = vmatprep.mubr.msk.bf16.mxu1 %vm1230_vm1, %v1229_v9  ;;  %v541_v45 = vadd.f32 %v1431_v40, %v536_v41 }
 0x3a4   :  { %v545_v8 = vrot.slane %v544_v6, 2 }
 0x3a6   :  { %v546_v11 = vadd.f32 %v545_v8, %v544_v6 }
 0x3a8   :  { %v547_v14 = vrot.slane %v546_v11, 1 }
 0x3aa   :  { %v548_v15 = vadd.f32 %v547_v14, %v546_v11 }
 0x3ac   :  { %v549_v17 = vmul.f32 0.5, %v548_v15 }
 0x3ae   :  { %v550_v18 = vsub.f32 %v435_v1, %v549_v17  ;;  %v1159_v1 = vld [vmem:[%s1544_s3 + $0x70] sm:$0xff]  }
 0x3b0   :  { %v551_v20 = vmul.f32 %v550_v18, %v550_v18 }
 0x3b2   :  { %v552_v21 = vsel %vm509_vm8, %v551_v20, 0.0 }
 0x3b3   :  { %v553_v23 = vrot.slane %v552_v21, 4 }
 0x3b5   :  { %v554_v24 = vadd.f32 %v553_v23, %v552_v21 }
 0x3b7   :  { %v555_v26 = vrot.slane %v554_v24, 2 }
 0x3b9   :  { %v556_v27 = vadd.f32 %v555_v26, %v554_v24 }
 0x3bb   :  { %v557_v29 = vrot.slane %v556_v27, 1 }
 0x3bd   :  { %v558_v30 = vadd.f32 %v557_v29, %v556_v27 }
 0x3bf   :  { %v559_v31 = vmul.f32 0.5, %v558_v30 }
 0x3c1   :  { %v560_v32 = vadd.f32 1e-05, %v559_v31 }
 0x3c3   :  { %1183 = vrsqrt.f32 %v560_v32 }
 0x3cd   :  { %v1184_v38 = vpop.eup %1183 }
 0x3ce   :  { %v562_v39 = vmul.f32 %v1184_v38, %v550_v18 }
 0x3d0   :  { %v563_v43 = vmul.f32 %v562_v39, %v1427_v35 }
 0x3d2   :  { %v564_v44 = vadd.f32 %v563_v43, %v1431_v40 }
 0x3d4   :  { %v589_v46 = vrot.slane %v564_v44, 6 }
 0x3d6   :  { %v1438_v47 = vsel %vm509_vm8, %v541_v45, %v589_v46  ;;  %v1161_v46 = vld [vmem:[%s1544_s3 + $0x80] sm:$0xff]  }
 0x3d7   :  { %1113 = vmatpush3.bf16.msra.mxu1 %v1161_v46 }
 0x3d8   :  { %1114 = vmatprep.subr.bf16.mxu1 %v1229_v9 }
 0x474   :  { %v471_v48 = vpop.f32.mrb[4].mxu1 }
 0x475   :  { %v478_v49 = vrot.slane %v471_v48, 4  ;;  %v1090_v50 = vpop.f32.mrb[5].mxu1  ;;  %v1162_v48 = vld [vmem:[%s1544_s3 + $0x88] sm:$0xff]  }
 0x476   :  { %v474_v51 = vpop.f32.mrb[6].mxu1  ;;  %1115 = vmatpush3.bf16.msra.mxu1 %v1162_v48  ;;  %v1167_v50 = vld [vmem:[%s1544_s3 + $0xb0] sm:$0xff]  }
 0x477   :  { %v480_v52 = vadd.f32 %v478_v49, %v1404_v13  ;;  %v1091_v53 = vpop.f32.mrb[7].mxu1  ;;  %v1154_v13 = vld [vmem:[%s1544_s3 + $0x48] sm:$0xff]   ;;  %1116 = vmatprep.subr.bf16.mxu1 %v1229_v9  ;;  %v1168_v51 = vld [vmem:[%s1544_s3 + $0xb8] sm:$0xff]  }
 0x478   :  { %1095 = vmatpush3.bf16.msra.mxu0 %v1154_v13  ;;  %v1166_v49 = vld [vmem:[%s1544_s3 + $0xa8] sm:$0xff]  }
 0x479   :  { %v959_v54 = vmul.f32 -1.442695, %v480_v52  ;;  %1096 = vmatprep.subr.bf16.mxu0 %v1229_v9  ;;  %v599_v52 = vsub.s32 3, %v1376_v42 }
 0x47b   :  { %1185 = vpow2.f32 %v959_v54  ;;  %v600_v53 = vrot.slane %v1401_v10, %v599_v52 }
 0x47c   :  { %1097 = vmatpush3.bf16.msra.mxu0 %v1155_v61 }
 0x47d   :  { %1098 = vmatprep.subr.bf16.mxu0 %v1229_v9 }
 0x480   :  { %1099 = vmatpush3.bf16.msra.mxu0 %v1156_v62 }
 0x481   :  { %1100 = vmatprep.subr.bf16.mxu0 %v1229_v9 }
 0x484   :  { %1101 = vmatpush3.bf16.msra.mxu0 %v1157_v63 }
 0x485   :  { %v1186_v55 = vpop.eup %1185  ;;  %1102 = vmatprep.subr.bf16.mxu0 %v1229_v9 }
 0x486   :  { %v484_v56 = vadd.f32 1.0, %v1186_v55 }
 0x488   :  { %1187 = vrcp.f32 %v484_v56  ;;  %1103 = vmatpush3.bf16.msra.mxu0 %v1158_v0 }
 0x489   :  { %1104 = vmatprep.subr.bf16.mxu0 %v1229_v9 }
 0x48c   :  { %1105 = vmatpush3.bf16.msra.mxu0 %v1159_v1 }
 0x48d   :  { %1106 = vmatprep.subr.bf16.mxu0 %v1229_v9 }
 0x490   :  { %1107 = vmatpush3.bf16.msra.mxu0 %v1160_v2 }
 0x492   :  { %v1188_v57 = vpop.eup %1187 }
 0x493   :  { %v488_v58 = vrot.slane %v1188_v57, 4 }
 0x495   :  { %490 = vrot.lane.b32.xlu1 %v488_v58, %s1232_s19  ;;  %492 = vrot.lane.b32.xlu0 %v488_v58, %s1233_s20 }
 0x499   :  { %496 = vrot.lane.b32.xlu0 %v488_v58, %s1234_s2 }
 0x507   :  { %v493_v3 = vpop.permute.xlu0 %492  ;;  %v491_v7 = vpop.permute.xlu1 %490 }
 0x508   :  { %v494_v4 = vmul.f32 2.0, %v493_v3  ;;  %v498_v11 = vmul.f32 %v491_v7, %v1417_v59 }
 0x50a   :  { %v960_v5 = vadd.f32 -1.0, %v494_v4 }
 0x50b   :  { %v497_v16 = vpop.permute.xlu0 %496 }
 0x50c   :  { %v500_v6 = vrot.slane %v960_v5, 4 }
 0x50e   :  { %v502_v8 = vmul.f32 %v1188_v57, %v500_v6 }
 0x510   :  { %v504_v12 = vrot.slane %v502_v8, 4 }
 0x512   :  { %v506_v14 = vadd.f32 %v504_v12, %v498_v11 }
 0x514   :  { %1189 = vtanh.f32 %v506_v14 }
 0x51e   :  { %v1190_v15 = vpop.eup %1189 }
 0x51f   :  { %v508_v17 = vmul.f32 %v1190_v15, %v497_v16 }
 0x521   :  { %v565_v18 = vsel %vm509_vm8, %v508_v17, 0.0 }
 0x522   :  { %v566_v19 = vrot.slane %v565_v18, 4 }
 0x524   :  { %v567_v20 = vadd.f32 %v566_v19, %v565_v18 }
 0x526   :  { %v568_v21 = vrot.slane %v567_v20, 2 }
 0x528   :  { %v569_v22 = vadd.f32 %v568_v21, %v567_v20 }
 0x52a   :  { %v570_v23 = vrot.slane %v569_v22, 1 }
 0x52c   :  { %v571_v24 = vadd.f32 %v570_v23, %v569_v22 }
 0x52e   :  { %v572_v25 = vmul.f32 0.5, %v571_v24 }
 0x530   :  { %v573_v26 = vsub.f32 %v508_v17, %v572_v25 }
 0x532   :  { %v574_v27 = vmul.f32 %v573_v26, %v573_v26 }
 0x534   :  { %v575_v28 = vsel %vm509_vm8, %v574_v27, 0.0 }
 0x535   :  { %v576_v59 = vrot.slane %v575_v28, 4 }
 0x537   :  { %v577_v29 = vadd.f32 %v576_v59, %v575_v28 }
 0x539   :  { %v578_v30 = vrot.slane %v577_v29, 2 }
 0x53b   :  { %v579_v31 = vadd.f32 %v578_v30, %v577_v29 }
 0x53d   :  { %v580_v32 = vrot.slane %v579_v31, 1 }
 0x53f   :  { %v581_v33 = vadd.f32 %v580_v32, %v579_v31 }
 0x541   :  { %v582_v34 = vmul.f32 0.5, %v581_v33 }
 0x543   :  { %v583_v36 = vadd.f32 1e-05, %v582_v34 }
 0x545   :  { %1191 = vrsqrt.f32 %v583_v36 }
 0x54f   :  { %v1192_v37 = vpop.eup %1191 }
 0x550   :  { %v585_v38 = vmul.f32 %v1192_v37, %v573_v26 }
 0x552   :  { %v586_v39 = vmul.f32 %v585_v38, %v1427_v35  ;;  %v1163_v35 = vld [vmem:[%s1544_s3 + $0x90] sm:$0xff]  }
 0x553   :  { %1117 = vmatpush3.bf16.msra.mxu1 %v1163_v35 }
 0x554   :  { %v587_v41 = vadd.f32 %v586_v39, %v1431_v40  ;;  %v1164_v40 = vld [vmem:[%s1544_s3 + $0x98] sm:$0xff]   ;;  %1118 = vmatprep.subr.bf16.mxu1 %v1229_v9 }
 0x556   :  { %v592_v43 = vrot.slane %v587_v41, 4 }
 0x557   :  { %1119 = vmatpush3.bf16.msra.mxu1 %v1164_v40 }
 0x558   :  { %v595_v44 = vsel %vm43_vm0, %v1438_v47, %v592_v43  ;;  %v1165_v47 = vld [vmem:[%s1544_s3 + $0xa0] sm:$0xff]   ;;  %1120 = vmatprep.subr.bf16.mxu1 %v1229_v9  ;;  %s1235_s3 = smov [#allocation2]  }
 0x559   :  { %v596_v45 = vpack.c.bf16 %v595_v44, %v595_v44  ;;  %s905_s24 = sshll.u32 %s1235_s3, 4  ;;  %s906_s24 = int_to_ptr.vmem [resolvable:$true] %s905_s24 }
 0x55a   :  { %s1205_s25 = scalar_lea.vmem %s906_s24, 32  ;;  %p1210_p1 = scmp.lt.s32.totalorder %s906_s24, %s906_s24 }
 0x55b   :  { %1109 = vmatmul.mubr.bf16.vlgmr.msra.gmra.mrb[8].mxu0 %v596_v45  ;;  %1121 = vmatpush3.bf16.msra.mxu1 %v1165_v47  ;;  %p1206_p0 = scmp.ne.s32.totalorder %s906_s24, %s1205_s25  ;;  %p1211_p2 = scmp.lt.s32.totalorder %s1205_s25, %s1205_s25 }
 0x55c   :  { %1122 = vmatprep.subr.bf16.mxu1 %v1229_v9 }
 0x55d   :  { %p1212_p3 = por %p1211_p2, %p1210_p1 }
 0x55f   :  { %1123 = vmatpush3.bf16.msra.mxu1 %v1166_v49  ;;  %p1213_p4 = pnand %p1212_p3, %p1206_p0 }
 0x560   :  { %1124 = vmatprep.subr.bf16.mxu1 %v1229_v9 }
 0x563   :  { %1125 = vmatpush3.bf16.msra.mxu1 %v1167_v50 }
 0x564   :  { %1126 = vmatprep.subr.bf16.mxu1 %v1229_v9 }
 0x567   :  { %1127 = vmatpush3.bf16.msra.mxu1 %v1168_v51 }
 0x62e   :  { %v683_v54 = vpop.f32.mrb[8].mxu0 }
 0x62f   :  { %v684_v55 = vadd.f32 %v683_v54, %v600_v53  ;;  %v1110_v56 = vpop.f32.mrb[9].mxu0 }
 0x630   :  { %v686_v57 = vpop.f32.mrb[10].mxu0 }
 0x631   :  { %v689_v58 = vsel %vm509_vm8, %v684_v55, 0.0  ;;  %v727_v60 = vrot.slane %v684_v55, 2  ;;  %v761_v13 = vrot.slane %v684_v55, 4  ;;  %v1111_v61 = vpop.f32.mrb[11].mxu0 }
 0x632   :  { %v690_v62 = vrot.slane %v689_v58, 4 }
 0x633   :  { %v729_v63 = vsel %vm509_vm8, %v727_v60, 0.0  ;;  %v763_v0 = vsel %vm509_vm8, %v761_v13, 0.0  ;;  %v717_v60 = vsub.s32 5, %v1376_v42 }
 0x634   :  { %v691_v9 = vadd.f32 %v690_v62, %v689_v58  ;;  %v730_v1 = vrot.slane %v729_v63, 4  ;;  %v764_v2 = vrot.slane %v763_v0, 4  ;;  %v712_v58 = vsub.s32 4, %v1376_v42 }
 0x636   :  { %v692_v3 = vrot.slane %v691_v9, 2  ;;  %v731_v4 = vadd.f32 %v730_v1, %v729_v63  ;;  %v765_v5 = vadd.f32 %v764_v2, %v763_v0  ;;  %v713_v13 = vrot.slane %v1401_v10, %v712_v58 }
 0x637   :  { %v718_v63 = vrot.slane %v1401_v10, %v717_v60 }
 0x638   :  { %v693_v6 = vadd.f32 %v692_v3, %v691_v9  ;;  %v732_v7 = vrot.slane %v731_v4, 2  ;;  %v766_v8 = vrot.slane %v765_v5, 2 }
 0x63a   :  { %v694_v11 = vrot.slane %v693_v6, 1  ;;  %v733_v12 = vadd.f32 %v732_v7, %v731_v4  ;;  %v767_v14 = vadd.f32 %v766_v8, %v765_v5 }
 0x63c   :  { %v695_v15 = vadd.f32 %v694_v11, %v693_v6  ;;  %v734_v16 = vrot.slane %v733_v12, 1  ;;  %v768_v17 = vrot.slane %v767_v14, 1 }
 0x63e   :  { %v696_v18 = vmul.f32 0.5, %v695_v15  ;;  %v735_v19 = vadd.f32 %v734_v16, %v733_v12  ;;  %v769_v20 = vadd.f32 %v768_v17, %v767_v14 }
 0x640   :  { %v697_v21 = vsub.f32 %v684_v55, %v696_v18  ;;  %v736_v22 = vmul.f32 0.5, %v735_v19  ;;  %v770_v23 = vmul.f32 0.5, %v769_v20 }
 0x642   :  { %v698_v24 = vmul.f32 %v697_v21, %v697_v21  ;;  %v737_v25 = vsub.f32 %v684_v55, %v736_v22  ;;  %v771_v26 = vsub.f32 %v684_v55, %v770_v23 }
 0x644   :  { %v699_v27 = vsel %vm509_vm8, %v698_v24, 0.0  ;;  %v738_v28 = vmul.f32 %v737_v25, %v737_v25  ;;  %v772_v59 = vmul.f32 %v771_v26, %v771_v26 }
 0x645   :  { %v700_v29 = vrot.slane %v699_v27, 4 }
 0x646   :  { %v740_v30 = vrot.slane %v738_v28, 2  ;;  %v774_v31 = vrot.slane %v772_v59, 4 }
 0x647   :  { %v701_v32 = vadd.f32 %v700_v29, %v699_v27  ;;  %v800_v29 = vsub.s32 6, %v1376_v42 }
 0x648   :  { %v742_v33 = vsel %vm509_vm8, %v740_v30, 0.0  ;;  %v776_v34 = vsel %vm509_vm8, %v774_v31, 0.0 }
 0x649   :  { %v702_v36 = vrot.slane %v701_v32, 2  ;;  %v743_v37 = vrot.slane %v742_v33, 4  ;;  %v777_v38 = vrot.slane %v776_v34, 4  ;;  %v801_v30 = vrot.slane %v1401_v10, %v800_v29 }
 0x64b   :  { %v703_v39 = vadd.f32 %v702_v36, %v701_v32  ;;  %v744_v41 = vadd.f32 %v743_v37, %v742_v33  ;;  %v778_v43 = vadd.f32 %v777_v38, %v776_v34 }
 0x64d   :  { %v704_v44 = vrot.slane %v703_v39, 1  ;;  %v745_v45 = vrot.slane %v744_v41, 2  ;;  %v779_v46 = vrot.slane %v778_v43, 2 }
 0x64f   :  { %v705_v48 = vadd.f32 %v704_v44, %v703_v39  ;;  %v746_v35 = vadd.f32 %v745_v45, %v744_v41  ;;  %v780_v40 = vadd.f32 %v779_v46, %v778_v43 }
 0x651   :  { %v706_v47 = vmul.f32 0.5, %v705_v48  ;;  %v747_v49 = vrot.slane %v746_v35, 1  ;;  %v781_v50 = vrot.slane %v780_v40, 1 }
 0x653   :  { %v707_v51 = vadd.f32 1e-05, %v706_v47  ;;  %v748_v52 = vadd.f32 %v747_v49, %v746_v35  ;;  %v782_v53 = vadd.f32 %v781_v50, %v780_v40 }
 0x655   :  { %1193 = vrsqrt.f32 %v707_v51  ;;  %v749_v54 = vmul.f32 0.5, %v748_v52  ;;  %v783_v55 = vmul.f32 0.5, %v782_v53 }
 0x657   :  { %v750_v56 = vadd.f32 1e-05, %v749_v54  ;;  %v784_v57 = vadd.f32 1e-05, %v783_v55 }
 0x659   :  { %1195 = vrsqrt.f32 %v750_v56 }
 0x65a   :  { %1197 = vrsqrt.f32 %v784_v57 }
 0x65f   :  { %v1194_v61 = vpop.eup %1193 }
 0x660   :  { %v709_v62 = vmul.f32 %v1194_v61, %v697_v21 }
 0x662   :  { %v714_v0 = vmul.f32 %v713_v13, %v709_v62 }
 0x663   :  { %v1196_v9 = vpop.eup %1195 }
 0x664   :  { %v1198_v1 = vpop.eup %1197  ;;  %v752_v2 = vmul.f32 %v1196_v9, %v737_v25  ;;  %v719_v3 = vadd.f32 %v718_v63, %v714_v0 }
 0x665   :  { %v786_v4 = vmul.f32 %v1198_v1, %v771_v26 }
 0x666   :  { %v721_v5 = vmin.f32 %v719_v3, 0.0  ;;  %v753_v6 = vmul.f32 %v752_v2, %v713_v13  ;;  %vm720_vm9 = vcmp.gt.f32.partialorder %v719_v3, 0.0 }
 0x667   :  { %v787_v7 = vmul.f32 %v786_v4, %v713_v13 }
 0x668   :  { %v722_v8 = vmul.f32 1.442695, %v721_v5  ;;  %v754_v11 = vadd.f32 %v753_v6, %v718_v63 }
 0x669   :  { %v788_v12 = vadd.f32 %v787_v7, %v718_v63 }
 0x66a   :  { %1199 = vpow2.f32 %v722_v8  ;;  %v756_v14 = vmin.f32 %v754_v11, 0.0  ;;  %vm755_vm10 = vcmp.gt.f32.partialorder %v754_v11, 0.0 }
 0x66b   :  { %v790_v15 = vmin.f32 %v788_v12, 0.0  ;;  %vm789_vm11 = vcmp.gt.f32.partialorder %v788_v12, 0.0 }
 0x66c   :  { %v757_v16 = vmul.f32 1.442695, %v756_v14 }
 0x66d   :  { %v791_v17 = vmul.f32 1.442695, %v790_v15 }
 0x66e   :  { %1201 = vpow2.f32 %v757_v16 }
 0x66f   :  { %1203 = vpow2.f32 %v791_v17 }
 0x674   :  { %v1200_v18 = vpop.eup %1199 }
 0x675   :  { %v969_v19 = vadd.f32 -1.0, %v1200_v18 }
 0x677   :  { %v725_v24 = vsel %vm720_vm9, %v719_v3, %v969_v19 }
 0x678   :  { %v1202_v20 = vpop.eup %1201 }
 0x679   :  { %v1204_v21 = vpop.eup %1203  ;;  %v970_v22 = vadd.f32 -1.0, %v1202_v20 }
 0x67a   :  { %v971_v23 = vadd.f32 -1.0, %v1204_v21 }
 0x67b   :  { %v760_v25 = vsel %vm755_vm10, %v754_v11, %v970_v22 }
 0x67c   :  { %v794_v26 = vsel %vm789_vm11, %v788_v12, %v971_v23  ;;  %v795_v27 = vsel %vm509_vm8, %v725_v24, %v760_v25 }
 0x67d   :  { %v796_v28 = vsel %vm43_vm0, %v795_v27, %v794_v26 }
 0x67e   :  { %v797_v59 = vpack.c.bf16 %v796_v28, %v796_v28 }
 0x680   :  { %1129 = vmatmul.mubr.bf16.vlgmr.msra.gmra.mrb[8].mxu1 %v797_v59 }
 0x753   :  { %v884_v31 = vpop.f32.mrb[8].mxu1 }
 0x754   :  { %v885_v32 = vadd.f32 %v884_v31, %v801_v30  ;;  %v1130_v33 = vpop.f32.mrb[9].mxu1 }
 0x755   :  { %v887_v34 = vpop.f32.mrb[10].mxu1 }
 0x756   :  { %v892_v36 = vrot.slane %v885_v32, 2  ;;  %v1131_v37 = vpop.f32.mrb[11].mxu1  ;;  %v895_v39 = vrot.slane %v885_v32, 4 }
 0x758   :  { %v894_v38 = vadd.f32 %v892_v36, %v885_v32 }
 0x75a   :  { %v897_v41 = vadd.f32 %v895_v39, %v894_v38 }
 0x75c   :  { %898 = vst [vmem:[#allocation2] sm:$0x3] %v897_v41 }
 0x75d   :  { %1216 = shalt.err (!%p1213_p4)
}
 0x75e   :  { %s1217_s28 = scalar_lea.hbm %s1545_s4, 32 }
 0x75f   :  { %p1218_p5 = scmp.ne.s32.totalorder %s1545_s4, %s1217_s28  ;;  %p1221_p6 = scmp.lt.u32.totalorder %s1217_s28, %s1545_s4 }
 0x761   :  { %p1223_p7 = pnand %p1221_p6, %p1218_p5 }
 0x763   :  { %1226 = shalt.err (!%p1223_p7)
}
 0x764   :  { %908 = dma.vmem_to_hbm [thread:$0]  %s906_s24, 32, %s1545_s4, [#allocation3]  }
 0x765   :  { %1227 = dma.done.wait [#allocation3], 32  }
 0x766   :  { %1228 = vsyncadd [#allocation3], 4294967264 }
 0x767   :  { %912 = vsyncpa [#allocation3], 1 }

</bundles_post_ra>
